<compile_context>
chip_gen: v6e
topology: v6e:2x2x1
jax: 0.10.0
libtpu: 0.0.40
codegen_flags: <defaults>
</compile_context>

<pallas_src>
import functools

import numpy as np
import jax
import jax.numpy as jnp
from jax.experimental import pallas as pl
from jax.experimental.pallas import tpu as pltpu

_LOG_2PI = float(np.log(2.0 * np.pi))


def vmf_kernel(x_ref, w1_ref, b1_ref, w2_ref, b2_ref,
               w3mu_ref, b3mu_ref, w3sig_ref, b3sig_ref,
               seg_ref, eps_ref, z_ref, logq_ref, *, n_samples, latent_dim):
    """Fused encoder MLP + reparameterized sample + log q(z|x) for one batch tile.

      x    : (TB, D)
      w1   : (D, 2L)      b1 : (1, 2L)
      w2   : (2L, 2L)     b2 : (1, 2L)
      w3mu : (2L, L)      b3mu : (1, L)      (split mu head)
      w3sig: (2L, L)      b3sig: (1, L)      (split sigma head)
      seg  : (S*L, S)     one-hot sample-segment matrix (per-sample sum on MXU)
      eps  : (TB, S*L)    standard-normal draws, lane-dense slab
      z    : (TB, S*L)    output sample, lane-dense slab
      logq : (TB, S)      output log-density (summed over latent dim)
    """
    x = x_ref[...]

    # Encoder MLP: Linear -> ReLU -> Linear -> ReLU  (all on the MXU)
    h1 = jnp.dot(x, w1_ref[...], preferred_element_type=jnp.float32) + b1_ref[...]
    h1 = jnp.maximum(h1, 0.0)
    h2 = jnp.dot(h1, w2_ref[...], preferred_element_type=jnp.float32) + b2_ref[...]
    h2 = jnp.maximum(h2, 0.0)

    # Split head: two small matmuls instead of slicing the lane axis at offset L.
    mu = jnp.dot(h2, w3mu_ref[...], preferred_element_type=jnp.float32) + b3mu_ref[...]        # (TB, L)
    sigma_arg = jnp.dot(h2, w3sig_ref[...], preferred_element_type=jnp.float32) + b3sig_ref[...]
    sigma = jax.nn.softplus(sigma_arg)                                                          # (TB, L)

    # Reparameterization on the lane-dense (TB, S*L) slab.  eps layout is
    # [s0:l0..lL-1, s1:l0..lL-1, ...], so tiling mu/sigma S times along lanes matches.
    eps = eps_ref[...]                                  # (TB, S*L)
    mu_s = jnp.tile(mu, (1, n_samples))                 # (TB, S*L)
    sig_s = jnp.tile(sigma, (1, n_samples))             # (TB, S*L)
    z_ref[...] = mu_s + sig_s * eps

    # log q(z|x) with (z - mu) = sigma * eps:
    #   sum_l [ -0.5*log(2*pi) - log(sigma_l) - 0.5*eps_{s,l}^2 ]
    log_sigma_sum = jnp.sum(jnp.log(sigma), axis=-1, keepdims=True)                             # (TB, 1)
    e2_sum = jnp.dot(eps * eps, seg_ref[...], preferred_element_type=jnp.float32)               # (TB, S)
    logq_ref[...] = (-0.5 * latent_dim * _LOG_2PI) - log_sigma_sum - 0.5 * e2_sum


def variational_mean_field_forward(x, params, eps, *, block_b=512):
    """Wrapper: batch grid, resident weights, lane-dense 2-D outputs."""
    B, D = x.shape
    S, L = eps.shape[1], eps.shape[2]
    H = 2 * L
    w1, b1, w2, b2, w3, b3 = params

    # Split the third Linear into mu / sigma heads (done once, outside the kernel).
    w3_mu, w3_sig = w3[:, :L], w3[:, L:]
    b3_mu, b3_sig = b3[:, :L], b3[:, L:]

    # One-hot sample-segment matrix: seg[s*L + l, s] = 1  (per-sample reduce via MXU).
    seg = jnp.asarray(
        (np.arange(S * L)[:, None] // L == np.arange(S)[None, :]).astype(np.float32))

    # Batch tile: multiple of 8 sublanes; pad batch to a multiple of the tile.
    TB = min(block_b, B)
    TB = max(8, -(-TB // 8) * 8)
    n_blocks = int(pl.cdiv(B, TB))
    B_pad = n_blocks * TB

    eps2d = eps.reshape(B, S * L)
    if B_pad != B:
        x = jnp.pad(x, ((0, B_pad - B), (0, 0)))
        eps2d = jnp.pad(eps2d, ((0, B_pad - B), (0, 0)))

    const = lambda shape: pl.BlockSpec(shape, lambda i: (0, 0))
    row_tile = lambda cols: pl.BlockSpec((TB, cols), lambda i: (i, 0))

    weight_bytes = 4 * (w1.size + b1.size + w2.size + b2.size + w3.size + b3.size + seg.size)
    cost = pl.CostEstimate(
        flops=2 * B_pad * (D * H + H * H + 2 * H * L + S * L * S),
        transcendentals=3 * B_pad * L,
        bytes_accessed=4 * (B_pad * D + 2 * B_pad * S * L + B_pad * S) + weight_bytes,
    )

    z2d, logq2d = pl.pallas_call(
        functools.partial(vmf_kernel, n_samples=S, latent_dim=L),
        out_shape=(
            jax.ShapeDtypeStruct((B_pad, S * L), jnp.float32),   # z slab
            jax.ShapeDtypeStruct((B_pad, S), jnp.float32),       # log_q_z
        ),
        grid=(n_blocks,),
        in_specs=[
            row_tile(D),                 # x
            const(w1.shape), const(b1.shape),
            const(w2.shape), const(b2.shape),
            const(w3_mu.shape), const(b3_mu.shape),
            const(w3_sig.shape), const(b3_sig.shape),
            const(seg.shape),            # sample-segment matrix
            row_tile(S * L),             # eps
        ],
        out_specs=(
            row_tile(S * L),             # z
            row_tile(S),                 # log_q
        ),
        compiler_params=pltpu.CompilerParams(dimension_semantics=("parallel",)),
        cost_estimate=cost,
    )(x, w1, b1, w2, b2, w3_mu, b3_mu, w3_sig, b3_sig, seg, eps2d)

    z = z2d[:B].reshape(B, S, L)
    log_q_z = logq2d[:B].reshape(B, S, 1)
    return z, log_q_z


def init_params(key, data_dim, latent_dim):
    """Deterministic parameter init matching the nn.Linear shapes of FNN(D, 2L, 2L)."""
    h = 2 * latent_dim
    ks = jax.random.split(key, 6)

    def linear(kw, kb, fan_in, fan_out):
        bound = 1.0 / np.sqrt(fan_in)
        w = jax.random.uniform(kw, (fan_in, fan_out), jnp.float32, -bound, bound)
        b = jax.random.uniform(kb, (1, fan_out), jnp.float32, -bound, bound)
        return w, b

    w1, b1 = linear(ks[0], ks[1], data_dim, h)
    w2, b2 = linear(ks[2], ks[3], h, h)
    w3, b3 = linear(ks[4], ks[5], h, h)
    return (w1, b1, w2, b2, w3, b3)


def reference_forward(x, params, eps):
    """Pure-JAX reference mirroring the PyTorch forward (for a sanity check)."""
    w1, b1, w2, b2, w3, b3 = params
    h1 = jax.nn.relu(x @ w1 + b1)
    h2 = jax.nn.relu(h1 @ w2 + b2)
    out = (h2 @ w3 + b3)[:, None, :]                 # unsqueeze(1)
    L = out.shape[-1] // 2
    mu, sigma_arg = out[..., :L], out[..., L:]
    sigma = jax.nn.softplus(sigma_arg)
    z = mu + sigma * eps
    sigma2 = sigma ** 2
    log_q = -0.5 * jnp.log(2 * np.pi * sigma2) - (z - mu) ** 2 / (2 * sigma2)
    return z, jnp.sum(log_q, axis=-1, keepdims=True)


if __name__ == "__main__":
    data_dim, latent_dim = 16, 8
    batch, n_samples = 8, 4

    key = jax.random.PRNGKey(0)
    k_x, k_eps, k_p = jax.random.split(key, 3)

    x = jax.random.normal(k_x, (batch, data_dim), jnp.float32)
    # TODO(synk): torch.randn is drawn inside the PyTorch forward; here the
    # standard-normal draws are passed in explicitly for determinism.
    eps = jax.random.normal(k_eps, (batch, n_samples, latent_dim), jnp.float32)
    params = init_params(k_p, data_dim, latent_dim)

    z, log_q_z = variational_mean_field_forward(x, params, eps)
    jax.block_until_ready((z, log_q_z))

    z_ref, log_q_ref = reference_forward(x, params, eps)
    assert z.shape == (batch, n_samples, latent_dim)
    assert log_q_z.shape == (batch, n_samples, 1)
    np.testing.assert_allclose(np.asarray(z), np.asarray(z_ref), rtol=1e-5, atol=1e-5)
    np.testing.assert_allclose(np.asarray(log_q_z), np.asarray(log_q_ref), rtol=1e-4, atol=1e-4)

    print("KERNEL_OK")
</pallas_src>

<mosaic_0001>
module attributes {stable_mosaic.version = 11 : i64} {
  func.func @vmf_kernel(%arg0: i32, %arg1: memref<8x16xf32, #tpu.memory_space<vmem>>, %arg2: memref<16x16xf32, #tpu.memory_space<vmem>>, %arg3: memref<1x16xf32, #tpu.memory_space<vmem>>, %arg4: memref<16x16xf32, #tpu.memory_space<vmem>>, %arg5: memref<1x16xf32, #tpu.memory_space<vmem>>, %arg6: memref<16x8xf32, #tpu.memory_space<vmem>>, %arg7: memref<1x8xf32, #tpu.memory_space<vmem>>, %arg8: memref<16x8xf32, #tpu.memory_space<vmem>>, %arg9: memref<1x8xf32, #tpu.memory_space<vmem>>, %arg10: memref<32x4xf32, #tpu.memory_space<vmem>>, %arg11: memref<8x32xf32, #tpu.memory_space<vmem>>, %arg12: memref<8x32xf32, #tpu.memory_space<vmem>>, %arg13: memref<8x4xf32, #tpu.memory_space<vmem>>) attributes {dimension_semantics = [#tpu.dimension_semantics<parallel>], iteration_bounds = array<i64: 1>, scalar_prefetch = 0 : i64, scratch_operands = 0 : i64, tpu.core_type = #tpu.core_type<tc>, window_params = [{transform_indices = @transform_0, window_bounds = array<i64: 8, 16>}, {pipeline_mode = #tpu.pipeline_mode<synchronous>, transform_indices = @transform_1, window_bounds = array<i64: 16, 16>}, {pipeline_mode = #tpu.pipeline_mode<synchronous>, transform_indices = @transform_2, window_bounds = array<i64: 1, 16>}, {pipeline_mode = #tpu.pipeline_mode<synchronous>, transform_indices = @transform_3, window_bounds = array<i64: 16, 16>}, {pipeline_mode = #tpu.pipeline_mode<synchronous>, transform_indices = @transform_4, window_bounds = array<i64: 1, 16>}, {pipeline_mode = #tpu.pipeline_mode<synchronous>, transform_indices = @transform_5, window_bounds = array<i64: 16, 8>}, {pipeline_mode = #tpu.pipeline_mode<synchronous>, transform_indices = @transform_6, window_bounds = array<i64: 1, 8>}, {pipeline_mode = #tpu.pipeline_mode<synchronous>, transform_indices = @transform_7, window_bounds = array<i64: 16, 8>}, {pipeline_mode = #tpu.pipeline_mode<synchronous>, transform_indices = @transform_8, window_bounds = array<i64: 1, 8>}, {pipeline_mode = #tpu.pipeline_mode<synchronous>, transform_indices = @transform_9, window_bounds = array<i64: 32, 4>}, {transform_indices = @transform_10, window_bounds = array<i64: 8, 32>}, {transform_indices = @transform_11, window_bounds = array<i64: 8, 32>}, {transform_indices = @transform_12, window_bounds = array<i64: 8, 4>}]} {
    %c0 = arith.constant 0 : index
    %c0_0 = arith.constant 0 : index
    %0 = vector.load %arg1[%c0, %c0_0] : memref<8x16xf32, #tpu.memory_space<vmem>>, vector<8x16xf32>
    %c0_1 = arith.constant 0 : index
    %c0_2 = arith.constant 0 : index
    %1 = vector.load %arg2[%c0_1, %c0_2] : memref<16x16xf32, #tpu.memory_space<vmem>>, vector<16x16xf32>
    %cst = arith.constant dense<0.000000e+00> : vector<8x16xf32>
    %2 = tpu.matmul %0, %1, %cst {dimension_numbers = #tpu.dot_dimension_numbers<[1], [0], [0], [1], [0, 0, 1, 1], [], []>} : vector<8x16xf32>, vector<16x16xf32>, vector<8x16xf32> -> vector<8x16xf32>
    %c0_3 = arith.constant 0 : index
    %c0_4 = arith.constant 0 : index
    %3 = vector.load %arg3[%c0_3, %c0_4] : memref<1x16xf32, #tpu.memory_space<vmem>>, vector<1x16xf32>
    %4 = vector.broadcast %3 : vector<1x16xf32> to vector<8x16xf32>
    %5 = arith.addf %2, %4 : vector<8x16xf32>
    %cst_5 = arith.constant 0.000000e+00 : f32
    %6 = vector.broadcast %cst_5 : f32 to vector<8x16xf32>
    %7 = arith.maximumf %5, %6 : vector<8x16xf32>
    %c0_6 = arith.constant 0 : index
    %c0_7 = arith.constant 0 : index
    %8 = vector.load %arg4[%c0_6, %c0_7] : memref<16x16xf32, #tpu.memory_space<vmem>>, vector<16x16xf32>
    %cst_8 = arith.constant dense<0.000000e+00> : vector<8x16xf32>
    %9 = tpu.matmul %7, %8, %cst_8 {dimension_numbers = #tpu.dot_dimension_numbers<[1], [0], [0], [1], [0, 0, 1, 1], [], []>} : vector<8x16xf32>, vector<16x16xf32>, vector<8x16xf32> -> vector<8x16xf32>
    %c0_9 = arith.constant 0 : index
    %c0_10 = arith.constant 0 : index
    %10 = vector.load %arg5[%c0_9, %c0_10] : memref<1x16xf32, #tpu.memory_space<vmem>>, vector<1x16xf32>
    %11 = vector.broadcast %10 : vector<1x16xf32> to vector<8x16xf32>
    %12 = arith.addf %9, %11 : vector<8x16xf32>
    %cst_11 = arith.constant 0.000000e+00 : f32
    %13 = vector.broadcast %cst_11 : f32 to vector<8x16xf32>
    %14 = arith.maximumf %12, %13 : vector<8x16xf32>
    %c0_12 = arith.constant 0 : index
    %c0_13 = arith.constant 0 : index
    %15 = vector.load %arg6[%c0_12, %c0_13] : memref<16x8xf32, #tpu.memory_space<vmem>>, vector<16x8xf32>
    %cst_14 = arith.constant dense<0.000000e+00> : vector<8x8xf32>
    %16 = tpu.matmul %14, %15, %cst_14 {dimension_numbers = #tpu.dot_dimension_numbers<[1], [0], [0], [1], [0, 0, 1, 1], [], []>} : vector<8x16xf32>, vector<16x8xf32>, vector<8x8xf32> -> vector<8x8xf32>
    %c0_15 = arith.constant 0 : index
    %c0_16 = arith.constant 0 : index
    %17 = vector.load %arg7[%c0_15, %c0_16] : memref<1x8xf32, #tpu.memory_space<vmem>>, vector<1x8xf32>
    %18 = vector.broadcast %17 : vector<1x8xf32> to vector<8x8xf32>
    %19 = arith.addf %16, %18 : vector<8x8xf32>
    %c0_17 = arith.constant 0 : index
    %c0_18 = arith.constant 0 : index
    %20 = vector.load %arg8[%c0_17, %c0_18] : memref<16x8xf32, #tpu.memory_space<vmem>>, vector<16x8xf32>
    %cst_19 = arith.constant dense<0.000000e+00> : vector<8x8xf32>
    %21 = tpu.matmul %14, %20, %cst_19 {dimension_numbers = #tpu.dot_dimension_numbers<[1], [0], [0], [1], [0, 0, 1, 1], [], []>} : vector<8x16xf32>, vector<16x8xf32>, vector<8x8xf32> -> vector<8x8xf32>
    %c0_20 = arith.constant 0 : index
    %c0_21 = arith.constant 0 : index
    %22 = vector.load %arg9[%c0_20, %c0_21] : memref<1x8xf32, #tpu.memory_space<vmem>>, vector<1x8xf32>
    %23 = vector.broadcast %22 : vector<1x8xf32> to vector<8x8xf32>
    %24 = arith.addf %21, %23 : vector<8x8xf32>
    %cst_22 = arith.constant 0.000000e+00 : f32
    %25 = vector.broadcast %cst_22 : f32 to vector<8x8xf32>
    %26 = arith.maximumf %24, %25 : vector<8x8xf32>
    %27 = vector.broadcast %cst_22 : f32 to vector<8x8xf32>
    %28 = arith.subf %24, %27 : vector<8x8xf32>
    %29 = arith.cmpf one, %28, %28 : vector<8x8xf32>
    %30 = vector.broadcast %cst_22 : f32 to vector<8x8xf32>
    %31 = arith.addf %24, %30 : vector<8x8xf32>
    %32 = math.absf %28 : vector<8x8xf32>
    %cst_23 = arith.constant 0.000000e+00 : f32
    %33 = vector.broadcast %cst_23 : f32 to vector<8x8xf32>
    %34 = arith.subf %33, %32 : vector<8x8xf32>
    %35 = math.exp %34 : vector<8x8xf32>
    %36 = math.log1p %35 : vector<8x8xf32>
    %37 = arith.addf %26, %36 : vector<8x8xf32>
    %38 = arith.select %29, %31, %37 : vector<8x8xi1>, vector<8x8xf32>
    %c0_24 = arith.constant 0 : index
    %c0_25 = arith.constant 0 : index
    %39 = vector.load %arg11[%c0_24, %c0_25] : memref<8x32xf32, #tpu.memory_space<vmem>>, vector<8x32xf32>
    %40 = tpu.concatenate %19, %19, %19, %19 in 1 : vector<8x8xf32>, vector<8x8xf32>, vector<8x8xf32>, vector<8x8xf32> -> vector<8x32xf32>
    %41 = tpu.concatenate %38, %38, %38, %38 in 1 : vector<8x8xf32>, vector<8x8xf32>, vector<8x8xf32>, vector<8x8xf32> -> vector<8x32xf32>
    %42 = arith.mulf %41, %39 : vector<8x32xf32>
    %43 = arith.addf %40, %42 : vector<8x32xf32>
    %c0_26 = arith.constant 0 : index
    %c0_27 = arith.constant 0 : index
    %44 = vector.load %arg12[%c0_26, %c0_27] : memref<8x32xf32, #tpu.memory_space<vmem>>, vector<8x32xf32>
    tpu.vector_store %arg12[%c0_26, %c0_27], %43 {strides = array<i32>} : memref<8x32xf32, #tpu.memory_space<vmem>>, vector<8x32xf32>,
    %45 = math.log %38 : vector<8x8xf32>
    %cst_28 = arith.constant dense<0.000000e+00> : vector<8xf32>
    %46 = vector.multi_reduction <add>, %45, %cst_28 [1] : vector<8x8xf32> to vector<8xf32>
    %47 = vector.shape_cast %46 : vector<8xf32> to vector<8x1xf32>
    %48 = arith.mulf %39, %39 : vector<8x32xf32>
    %c0_29 = arith.constant 0 : index
    %c0_30 = arith.constant 0 : index
    %49 = vector.load %arg10[%c0_29, %c0_30] : memref<32x4xf32, #tpu.memory_space<vmem>>, vector<32x4xf32>
    %cst_31 = arith.constant dense<0.000000e+00> : vector<8x4xf32>
    %50 = tpu.matmul %48, %49, %cst_31 {dimension_numbers = #tpu.dot_dimension_numbers<[1], [0], [0], [1], [0, 0, 1, 1], [], []>} : vector<8x32xf32>, vector<32x4xf32>, vector<8x4xf32> -> vector<8x4xf32>
    %cst_32 = arith.constant -7.35150814 : f32
    %51 = vector.broadcast %cst_32 : f32 to vector<8x1xf32>
    %52 = arith.subf %51, %47 : vector<8x1xf32>
    %cst_33 = arith.constant 5.000000e-01 : f32
    %53 = vector.broadcast %cst_33 : f32 to vector<8x4xf32>
    %54 = arith.mulf %53, %50 : vector<8x4xf32>
    %55 = vector.broadcast %52 : vector<8x1xf32> to vector<8x4xf32>
    %56 = arith.subf %55, %54 : vector<8x4xf32>
    %c0_34 = arith.constant 0 : index
    %c0_35 = arith.constant 0 : index
    %57 = vector.load %arg13[%c0_34, %c0_35] : memref<8x4xf32, #tpu.memory_space<vmem>>, vector<8x4xf32>
    tpu.vector_store %arg13[%c0_34, %c0_35], %56 {strides = array<i32>} : memref<8x4xf32, #tpu.memory_space<vmem>>, vector<8x4xf32>,
    return
  }
  func.func @transform_0(%arg0: i32) -> (i32, i32) {
    %c0_i32 = arith.constant 0 : i32
    %c0_i32_0 = arith.constant 0 : i32
    return %arg0, %c0_i32 : i32, i32
  }
  func.func @transform_1(%arg0: i32) -> (i32, i32) {
    %c0_i32 = arith.constant 0 : i32
    %c0_i32_0 = arith.constant 0 : i32
    %c0_i32_1 = arith.constant 0 : i32
    return %c0_i32, %c0_i32_0 : i32, i32
  }
  func.func @transform_2(%arg0: i32) -> (i32, i32) {
    %c0_i32 = arith.constant 0 : i32
    %c0_i32_0 = arith.constant 0 : i32
    %c0_i32_1 = arith.constant 0 : i32
    return %c0_i32, %c0_i32_0 : i32, i32
  }
  func.func @transform_3(%arg0: i32) -> (i32, i32) {
    %c0_i32 = arith.constant 0 : i32
    %c0_i32_0 = arith.constant 0 : i32
    %c0_i32_1 = arith.constant 0 : i32
    return %c0_i32, %c0_i32_0 : i32, i32
  }
  func.func @transform_4(%arg0: i32) -> (i32, i32) {
    %c0_i32 = arith.constant 0 : i32
    %c0_i32_0 = arith.constant 0 : i32
    %c0_i32_1 = arith.constant 0 : i32
    return %c0_i32, %c0_i32_0 : i32, i32
  }
  func.func @transform_5(%arg0: i32) -> (i32, i32) {
    %c0_i32 = arith.constant 0 : i32
    %c0_i32_0 = arith.constant 0 : i32
    %c0_i32_1 = arith.constant 0 : i32
    return %c0_i32, %c0_i32_0 : i32, i32
  }
  func.func @transform_6(%arg0: i32) -> (i32, i32) {
    %c0_i32 = arith.constant 0 : i32
    %c0_i32_0 = arith.constant 0 : i32
    %c0_i32_1 = arith.constant 0 : i32
    return %c0_i32, %c0_i32_0 : i32, i32
  }
  func.func @transform_7(%arg0: i32) -> (i32, i32) {
    %c0_i32 = arith.constant 0 : i32
    %c0_i32_0 = arith.constant 0 : i32
    %c0_i32_1 = arith.constant 0 : i32
    return %c0_i32, %c0_i32_0 : i32, i32
  }
  func.func @transform_8(%arg0: i32) -> (i32, i32) {
    %c0_i32 = arith.constant 0 : i32
    %c0_i32_0 = arith.constant 0 : i32
    %c0_i32_1 = arith.constant 0 : i32
    return %c0_i32, %c0_i32_0 : i32, i32
  }
  func.func @transform_9(%arg0: i32) -> (i32, i32) {
    %c0_i32 = arith.constant 0 : i32
    %c0_i32_0 = arith.constant 0 : i32
    %c0_i32_1 = arith.constant 0 : i32
    return %c0_i32, %c0_i32_0 : i32, i32
  }
  func.func @transform_10(%arg0: i32) -> (i32, i32) {
    %c0_i32 = arith.constant 0 : i32
    %c0_i32_0 = arith.constant 0 : i32
    return %arg0, %c0_i32 : i32, i32
  }
  func.func @transform_11(%arg0: i32) -> (i32, i32) {
    %c0_i32 = arith.constant 0 : i32
    %c0_i32_0 = arith.constant 0 : i32
    return %arg0, %c0_i32 : i32, i32
  }
  func.func @transform_12(%arg0: i32) -> (i32, i32) {
    %c0_i32 = arith.constant 0 : i32
    %c0_i32_0 = arith.constant 0 : i32
    return %arg0, %c0_i32 : i32, i32
  }
}

</mosaic_0001>

<bundles_post_ra>
// kernel: tpu_custom_call.1
= control target key start
LH: loop header
LB: loop body
LE: loop exit
PB: predicated region body
PF: predicated region fallthrough
CT: control target
= control target key end

     0   :  { %v626_v1 = vmov 0.0   ;;  %vm627_vm0 = vmmov 0   ;;  %s778_s0 = inlined_call_operand.vmem [shape: f32[8,16], index: 0, kind: input, shape index: {}]   ;;  %s779_s1 = inlined_call_operand.vmem [shape: f32[16,16], index: 1, kind: input, shape index: {}]   ;;  %s780_s2 = inlined_call_operand.vmem [shape: f32[1,16], index: 2, kind: input, shape index: {}]   ;;  %s781_s3 = inlined_call_operand.vmem [shape: f32[16,16], index: 3, kind: input, shape index: {}]   ;;  %s782_s4 = inlined_call_operand.vmem [shape: f32[1,16], index: 4, kind: input, shape index: {}]   ;;  %s783_s5 = inlined_call_operand.vmem [shape: f32[16,8], index: 5, kind: input, shape index: {}]   ;;  %s784_s6 = inlined_call_operand.vmem [shape: f32[1,8], index: 6, kind: input, shape index: {}]   ;;  %s785_s7 = inlined_call_operand.vmem [shape: f32[16,8], index: 7, kind: input, shape index: {}]   ;;  %s786_s8 = inlined_call_operand.vmem [shape: f32[1,8], index: 8, kind: input, shape index: {}]   ;;  %s787_s9 = inlined_call_operand.vmem [shape: f32[32,4], index: 9, kind: input, shape index: {}]   ;;  %s788_s10 = inlined_call_operand.vmem [shape: f32[8,32], index: 10, kind: input, shape index: {}]   ;;  %s789_s11 = inlined_call_operand.hbm [shape: f32[8,32], index: 11, kind: output, shape index: {0}]   ;;  %s790_s12 = inlined_call_operand.vmem [shape: f32[8,4], index: 12, kind: output, shape index: {1}]  }
   0x1   :  { %v43_v0 = vld [vmem:[%s779_s1 + $0x8] sm:$0xff]  ;;  %553 = vmatprep.subr.mxu1 %v626_v1  ;;  %v42_v2 = vld [vmem:[%s779_s1] sm:$0xff]  ;;  %557 = vmatprep.mubr.msk.f32.mxu1 %vm627_vm0, %v626_v1 }
   0x2   :  { %18 = vsyncpa [#allocation3], 0  ;;  %554 = vmatpush3.msra.mxu1 %v43_v0  ;;  %v41_v3 = vld [vmem:[%s778_s0] sm:$0xff]  ;;  %vm51_vm1 = vcmask 130048   ;;  %567 = vmatprep.subr.mxu0 %v626_v1  ;;  %v127_v4 = vld [vmem:[%s781_s3 + $0x8] sm:$0xff]  ;;  %vm419_vm2 = vcmask 261120  }
   0x3   :  { %555 = vmatprep.subr.mxu1 %v626_v1  ;;  %571 = vmatprep.mubr.msk.f32.mxu0 %vm627_vm0, %v626_v1  ;;  %v126_v5 = vld [vmem:[%s781_s3] sm:$0xff]  ;;  %v292_v11 = vld [vmem:[%s785_s7 + $0x8] sm:$0xff]  ;;  %v430_v20 = vld [vmem:[%s787_s9 + $0x18] sm:$0xff]  ;;  %s629_s29 = smov 8   ;;  %s630_s0 = smov 24   ;;  %vm399_vm5 = vcmask 64512  }
   0x4   :  { %556 = vmatpush3.msra.mxu1 %v42_v2  ;;  %v527_v6 = vld [vmem:[%s780_s2] ss:$0 sm:$0xff]  ;;  %v210_v12 = vld [vmem:[%s783_s5 + $0x8] sm:$0xff]  ;;  %v429_v21 = vld [vmem:[%s787_s9 + $0x10] sm:$0xff]  ;;  %vm507_vm6 = vcmask 31744   ;;  %vm402_vm7 = vcmask 195584  }
   0x5   :  { %558 = vmatmul.mubr.msk.f32.vlgmr.msra.gmra.mxu1 %vm51_vm1, %v41_v3  ;;  %560 = vmatprep.subr.mxu1 %v626_v1  ;;  %v291_v13 = vld [vmem:[%s785_s7] sm:$0xff]  ;;  %v428_v22 = vld [vmem:[%s787_s9 + $0x8] sm:$0xff]  ;;  %s631_s13 = smov [#allocation2]  }
   0x6   :  { %564 = vmatprep.mubr.msk.f32.mxu1 %vm627_vm0, %v626_v1  ;;  %561 = vmatpush3.msra.mxu1 %v127_v4  ;;  %v209_v14 = vld [vmem:[%s783_s5] sm:$0xff]  ;;  %s515_s14 = sshll.u32 %s631_s13, 4  ;;  %s516_s14 = int_to_ptr.vmem [resolvable:$true] %s515_s14 }
   0x7   :  { %562 = vmatprep.subr.mxu1 %v626_v1  ;;  %568 = vmatpush3.msra.mxu0 %v210_v12  ;;  %v529_v15 = vld [vmem:[%s782_s4] ss:$0 sm:$0xff]  ;;  %p609_p1 = scmp.lt.s32.totalorder %s516_s14, %s516_s14 }
   0x8   :  { %563 = vmatpush3.msra.mxu1 %v126_v5  ;;  %569 = vmatprep.subr.mxu0 %v626_v1  ;;  %v751_v23 = vld [vmem:[%s788_s10] sm:$0xff]  ;;  %s628_s10 = smov 16  }
   0x9   :  { %574 = vmatprep.subr.mxu1 %v626_v1  ;;  %570 = vmatpush3.msra.mxu0 %v209_v14  ;;  %v427_v24 = vld [vmem:[%s787_s9] sm:$0xff]  ;;  %v426_v25 = vmul.f32 %v751_v23, %v751_v23 }
   0xa   :  { %581 = vmatprep.subr.mxu0 %v626_v1  ;;  %v533_v26 = vld [vmem:[%s786_s8] ss:$0 sm:$0xff] }
   0xb   :  { %v531_v46 = vld [vmem:[%s784_s6] ss:$0 sm:$0xff] }
  0xc5   :  { %v121_v7 = vpop.f32.mrf.mxu1 }
  0xc6   :  { %v122_v8 = vadd.f32 %v527_v6, %v121_v7 }
  0xc7   :  { %v559_v9 = vpop.f32.mrf.mxu1 }
  0xc8   :  { %v125_v10 = vmax.f32 %v122_v8, 0.0 }
  0xca   :  { %565 = vmatmul.mubr.msk.f32.vlgmr.msra.gmra.mxu1 %vm51_vm1, %v125_v10 }
  0xcb   :  { %578 = vmatprep.mubr.msk.f32.mxu1 %vm627_vm0, %v626_v1  ;;  %575 = vmatpush3.msra.mxu1 %v292_v11 }
  0xcc   :  { %576 = vmatprep.subr.mxu1 %v626_v1 }
  0xcd   :  { %577 = vmatpush3.msra.mxu1 %v291_v13 }
 0x18a   :  { %v204_v16 = vpop.f32.mrf.mxu1 }
 0x18b   :  { %v205_v17 = vadd.f32 %v529_v15, %v204_v16 }
 0x18c   :  { %v566_v18 = vpop.f32.mrf.mxu1 }
 0x18d   :  { %v208_v19 = vmax.f32 %v205_v17, 0.0 }
 0x18f   :  { %572 = vmatmul.mubr.msk.f32.vlgmr.msra.gmra.mxu0 %vm51_vm1, %v208_v19  ;;  %579 = vmatmul.mubr.msk.f32.vlgmr.msra.gmra.mxu1 %vm51_vm1, %v208_v19 }
 0x190   :  { %589 = vmatprep.mubr.msk.f32.mxu0 %vm627_vm0, %v626_v1  ;;  %582 = vmatpush3.msra.mxu0 %v430_v20 }
 0x191   :  { %583 = vmatprep.subr.mxu0 %v626_v1 }
 0x192   :  { %584 = vmatpush3.msra.mxu0 %v429_v21 }
 0x193   :  { %585 = vmatprep.subr.mxu0 %v626_v1 }
 0x194   :  { %586 = vmatpush3.msra.mxu0 %v428_v22 }
 0x195   :  { %587 = vmatprep.subr.mxu0 %v626_v1 }
 0x196   :  { %588 = vmatpush3.msra.mxu0 %v427_v24 }
 0x197   :  { %590 = vmatmul.mubr.msk.f32.vlgmr.msra.gmra.mxu0 %vm419_vm2, %v426_v25 }
 0x24f   :  { %v287_v27 = vpop.f32.mrf.mxu0  ;;  %v366_v28 = vpop.f32.mrf.mxu1 }
 0x250   :  { %v367_v29 = vadd.f32 %v533_v26, %v366_v28  ;;  %v288_v48 = vadd.f32 %v531_v46, %v287_v27 }
 0x251   :  { %v573_v30 = vpop.f32.mrf.mxu0  ;;  %v580_v31 = vpop.f32.mrf.mxu1 }
 0x252   :  { %v373_v32 = vand.u32 2147483647, %v367_v29  ;;  %v370_v43 = vmax.f32 %v367_v29, 0.0  ;;  %vm371_vm4 = vcmp.ne.f32.partialorder %v367_v29, %v367_v29 }
 0x254   :  { %v374_v33 = vsub.f32 0.0, %v373_v32 }
 0x256   :  { %v375_v34 = vmul.f32 1.442695, %v374_v33 }
 0x257   :  { %v500_v52 = vpop.f32.mrf.mxu0 }
 0x258   :  { %598 = vpow2.f32 %v375_v34  ;;  %v505_v57 = vmul.f32 0.5, %v500_v52 }
 0x259   :  { %v591_v53 = vpop.f32.mrf.mxu0 }
 0x265   :  { %v599_v35 = vpop.eup %598 }
 0x266   :  { %v377_v36 = vadd.f32 1.0, %v599_v35  ;;  %v380_v37 = vmul.f32 -0.5, %v599_v35  ;;  %v383_v39 = vand.u32 2147483647, %v599_v35 }
 0x268   :  { %600 = vlog2.f32 %v377_v36  ;;  %v381_v38 = vadd.f32 1.0, %v380_v37  ;;  %vm384_vm3 = vcmp.lt.f32.partialorder %v383_v39, 0.0004427343 }
 0x26a   :  { %v382_v42 = vmul.f32 %v599_v35, %v381_v38 }
 0x275   :  { %v601_v40 = vpop.eup %600 }
 0x276   :  { %v379_v41 = vmul.f32 0.6931472, %v601_v40 }
 0x278   :  { %v385_v44 = vsel %vm384_vm3, %v382_v42, %v379_v41 }
 0x279   :  { %v386_v45 = vadd.f32 %v385_v44, %v370_v43 }
 0x27b   :  { %v387_v47 = vsel %vm371_vm4, %v367_v29, %v386_v45 }
 0x27c   :  { %408 = vrot.lane.b32.xlu1 %v387_v47, %s628_s10  ;;  %602 = vlog2.f32 %v387_v47 }
 0x280   :  { %390 = vrot.lane.b32.xlu1 %v288_v48, %s629_s29 }
 0x284   :  { %411 = vrot.lane.b32.xlu1 %v387_v47, %s630_s0 }
 0x288   :  { %393 = vrot.lane.b32.xlu1 %v288_v48, %s628_s10 }
 0x289   :  { %v603_v49 = vpop.eup %602 }
 0x28a   :  { %v422_v50 = vmul.f32 0.6931472, %v603_v49 }
 0x28c   :  { %396 = vrot.lane.b32.xlu1 %v288_v48, %s630_s0  ;;  %v423_v51 = vsel %vm399_vm5, %v422_v50, 0.0 }
 0x28d   :  { %424 = vadd.xlane.f32.xlu0 %v423_v51 }
 0x2a3   :  { %405 = vrot.lane.b32.xlu0 %v387_v47, %s629_s29 }
 0x2ee   :  { %v409_v54 = vpop.permute.xlu1 %408 }
 0x2f2   :  { %v391_v55 = vpop.permute.xlu1 %390 }
 0x2f3   :  { %v400_v2 = vsel %vm399_vm5, %v288_v48, %v391_v55 }
 0x2f6   :  { %v412_v56 = vpop.permute.xlu1 %411 }
 0x2fa   :  { %v394_v58 = vpop.permute.xlu1 %393 }
 0x2fb   :  { %v401_v4 = vsel %vm51_vm1, %v400_v2, %v394_v58 }
 0x2fe   :  { %v397_v0 = vpop.permute.xlu1 %396 }
 0x2ff   :  { %v403_v6 = vsel %vm402_vm7, %v401_v4, %v397_v0 }
 0x316   :  { %v425_v59 = vpop.xlane.xlu0 %424 }
 0x317   :  { %v504_v60 = vsub.f32 -7.351508, %v425_v59 }
 0x319   :  { %v506_v61 = vsub.f32 %v504_v60, %v505_v57 }
 0x31a   :  { %v406_v62 = vpop.permute.xlu0 %405 }
 0x31b   :  { %508 = vst.msk [vmem:[%s790_s12] sm:$0xff] %vm507_vm6, %v506_v61  ;;  %v414_v63 = vsel %vm399_vm5, %v387_v47, %v406_v62  ;;  %s604_s12 = scalar_lea.vmem %s516_s14, 128 }
 0x31c   :  { %v415_v1 = vsel %vm51_vm1, %v414_v63, %v409_v54  ;;  %p605_p0 = scmp.ne.s32.totalorder %s516_s14, %s604_s12  ;;  %p610_p2 = scmp.lt.s32.totalorder %s604_s12, %s604_s12 }
 0x31d   :  { %v416_v3 = vsel %vm402_vm7, %v415_v1, %v412_v56 }
 0x31e   :  { %v417_v5 = vmul.f32 %v416_v3, %v751_v23  ;;  %p611_p3 = por %p610_p2, %p609_p1 }
 0x320   :  { %v418_v7 = vadd.f32 %v417_v5, %v403_v6  ;;  %p612_p4 = pnand %p611_p3, %p605_p0 }
 0x322   :  { %420 = vst.msk [vmem:[#allocation2] sm:$0xff] %vm419_vm2, %v418_v7 }
 0x323   :  { %615 = shalt.err (!%p612_p4)
}
 0x324   :  { %518 = dma.vmem_to_hbm [thread:$0]  %s516_s14, 128, %s789_s11, [#allocation3]  }
 0x325   :  { %624 = dma.done.wait [#allocation3], 128  }
 0x326   :  { %625 = vsyncadd [#allocation3], 4294967168 }
 0x327   :  { %526 = vsyncpa [#allocation3], 1 }

</bundles_post_ra>
